<compile_context>
chip_gen: v6e
topology: v6e:2x2x1
jax: 0.10.0
libtpu: 0.0.40
codegen_flags: <defaults>
</compile_context>

<pallas_src>
import numpy as np
import jax
import jax.numpy as jnp
from jax import lax
from jax.experimental import pallas as pl
from jax.experimental.pallas import tpu as pltpu

# ---- problem sizes (small, consistent with the module's __init__) ----
N = 16              # number of nodes
IN_FEATS = 8
HIDDEN = 8
HEADS = 2
NUM_ACTIONS = 4
NEG_SLOPE = 0.2     # DGL GATConv default negative_slope

D = HEADS * HIDDEN  # flattened node embedding dim (16)
E = 2 * N           # number of edges in the test graph (ring + self-loops)

# ---- parameter-slab layout (each section starts on an 8-sublane boundary) ----
SLAB_COLS  = D      # 16 lanes
ROW_GAT_W  = 0      # (IN_FEATS, D)
ROW_GAT_B  = 8      # (1, D)
ROW_AL     = 16     # (HEADS, D)        block-diag attn_l (per-head rows)
ROW_AR     = 24     # (D, HEADS)        block-diag attn_r (per-head columns)
ROW_A_W1   = 40     # (2*D, HIDDEN)
ROW_A_B1   = 72     # (1, HIDDEN)
ROW_A_W2   = 80     # (HIDDEN, NUM_ACTIONS)
ROW_A_B2   = 88     # (1, NUM_ACTIONS)
ROW_C_W1   = 96     # (D, HIDDEN)
ROW_C_B1   = 112    # (1, HIDDEN)
ROW_C_W2   = 120    # (HIDDEN, 1)
ROW_C_B2   = 128    # (1, 1)
SLAB_ROWS  = 136    # multiple of 8; total 136*16*4 B = 8.5 KiB -> one DMA


def _vmem():
    return pl.BlockSpec(memory_space=pltpu.MemorySpace.VMEM)


# ----------------------- fused forward kernel --------------------------
def fused_kernel(x_ref, p_ref, adj_t_ref, sel_ref, logits_ref, value_ref):
    x = x_ref[...]                                            # (N, IN_FEATS)
    adj_t = adj_t_ref[...]                                    # (N, N), adj_t[v, u]
    sel = sel_ref[...]                                        # (2E, N) one-hot [src; dst]

    # ---- GAT projection ----
    gat_w = p_ref[ROW_GAT_W:ROW_GAT_W + IN_FEATS, :]          # (IN_FEATS, D)
    feat = jnp.dot(x, gat_w, preferred_element_type=jnp.float32)   # (N, D)

    # ---- attention scores on the MXU, laid out for lane-axis softmax ----
    AL = p_ref[ROW_AL:ROW_AL + HEADS, :]                      # (HEADS, D) attn_l rows
    AR = p_ref[ROW_AR:ROW_AR + D, :][:, 0:HEADS]              # (D, HEADS) attn_r cols
    er = jnp.dot(feat, AR, preferred_element_type=jnp.float32)      # (N, HEADS): er[v, hd]
    # el along lanes: contract the feature axis of both operands -> (HEADS, N): el[hd, u]
    el = lax.dot_general(AL, feat, (((1,), (1,)), ((), ())),
                         preferred_element_type=jnp.float32)

    head_outs = []
    for hd in range(HEADS):                                   # static unroll (2 heads)
        fh = feat[:, hd * HIDDEN:(hd + 1) * HIDDEN]           # (N, HIDDEN)
        # e[v, u] = el[u] + er[v]; dest v on sublanes, source u on lanes
        e = er[:, hd:hd + 1] + el[hd:hd + 1, :]               # (N, N)
        e = jnp.where(e > 0, e, NEG_SLOPE * e)                # LeakyReLU(0.2)
        e = jnp.where(adj_t > 0, e, -1e30)                    # mask non-edges (once)
        # edge softmax over incoming edges of v -> LANE-axis reductions
        m = jnp.max(e, axis=-1, keepdims=True)                # (N, 1)
        p = jnp.exp(e - m)                                    # masked entries underflow to 0
        denom = jnp.sum(p, axis=-1, keepdims=True)            # (N, 1)
        alpha = p / denom                                     # (N_v, N_u)
        # out[v, k] = sum_u alpha[v, u] * fh[u, k] : plain MXU matmul, no transpose
        head_outs.append(jnp.dot(alpha, fh,
                                 preferred_element_type=jnp.float32))  # (N, HIDDEN)

    gat_b = p_ref[ROW_GAT_B:ROW_GAT_B + 1, :]                 # (1, D)
    rst = jnp.concatenate(head_outs, axis=1) + gat_b          # (N, D)
    h = jnp.where(rst > 0, rst, jnp.exp(rst) - 1.0)           # ELU

    # ---- actor head: per-edge concat(h_src, h_dst) realised as split matmuls ----
    gathered = jnp.dot(sel, h, preferred_element_type=jnp.float32)  # (2E, D)
    h_src = gathered[0:E, :]                                  # (E, D)
    h_dst = gathered[E:2 * E, :]                              # (E, D)
    a_w1 = p_ref[ROW_A_W1:ROW_A_W1 + 2 * D, :][:, 0:HIDDEN]   # (2D, HIDDEN)
    a_b1 = p_ref[ROW_A_B1:ROW_A_B1 + 1, :][:, 0:HIDDEN]       # (1, HIDDEN)
    z = (jnp.dot(h_src, a_w1[0:D, :], preferred_element_type=jnp.float32)
         + jnp.dot(h_dst, a_w1[D:2 * D, :], preferred_element_type=jnp.float32)
         + a_b1)
    z = jnp.maximum(z, 0.0)                                   # ReLU
    a_w2 = p_ref[ROW_A_W2:ROW_A_W2 + HIDDEN, :][:, 0:NUM_ACTIONS]
    a_b2 = p_ref[ROW_A_B2:ROW_A_B2 + 1, :][:, 0:NUM_ACTIONS]
    logits_ref[...] = jnp.dot(z, a_w2,
                              preferred_element_type=jnp.float32) + a_b2   # (E, A)

    # ---- critic head: dgl.mean_nodes -> MLP -> (1, 1) ----
    g = jnp.sum(h, axis=0, keepdims=True) * (1.0 / N)         # (1, D)
    c_w1 = p_ref[ROW_C_W1:ROW_C_W1 + D, :][:, 0:HIDDEN]
    c_b1 = p_ref[ROW_C_B1:ROW_C_B1 + 1, :][:, 0:HIDDEN]
    zc = jnp.maximum(jnp.dot(g, c_w1, preferred_element_type=jnp.float32) + c_b1, 0.0)
    c_w2 = p_ref[ROW_C_W2:ROW_C_W2 + HIDDEN, :][:, 0:1]
    c_b2 = p_ref[ROW_C_B2:ROW_C_B2 + 1, :][:, 0:1]
    value_ref[...] = jnp.dot(zc, c_w2,
                             preferred_element_type=jnp.float32) + c_b2    # (1, 1)


@jax.jit
def actor_critic_forward(x, param_slab, adj_t, sel):
    edge_logits, v = pl.pallas_call(
        fused_kernel,
        out_shape=(jax.ShapeDtypeStruct((E, NUM_ACTIONS), jnp.float32),
                   jax.ShapeDtypeStruct((1, 1), jnp.float32)),
        in_specs=[_vmem()] * 4,
        out_specs=(_vmem(), _vmem()),
    )(x, param_slab, adj_t, sel)
    # .mean() over the "batch" of one graph
    return edge_logits, v[0, 0]


# -------------------- host-side packing helpers ------------------------
def pack_params(params):
    """Pack all parameters into one (SLAB_ROWS, SLAB_COLS) f32 slab (single DMA)."""
    slab = np.zeros((SLAB_ROWS, SLAB_COLS), np.float32)
    slab[ROW_GAT_W:ROW_GAT_W + IN_FEATS, :D] = np.asarray(params["gat_w"])
    slab[ROW_GAT_B, :D] = np.asarray(params["gat_b"])[0]
    attn_l = np.asarray(params["attn_l"])
    attn_r = np.asarray(params["attn_r"])
    for hd in range(HEADS):
        # block-diagonal: head hd only touches feature columns hd*HIDDEN:(hd+1)*HIDDEN
        slab[ROW_AL + hd, hd * HIDDEN:(hd + 1) * HIDDEN] = attn_l[hd]
        slab[ROW_AR + hd * HIDDEN:ROW_AR + (hd + 1) * HIDDEN, hd] = attn_r[hd]
    slab[ROW_A_W1:ROW_A_W1 + 2 * D, :HIDDEN] = np.asarray(params["a_w1"])
    slab[ROW_A_B1, :HIDDEN] = np.asarray(params["a_b1"])[0]
    slab[ROW_A_W2:ROW_A_W2 + HIDDEN, :NUM_ACTIONS] = np.asarray(params["a_w2"])
    slab[ROW_A_B2, :NUM_ACTIONS] = np.asarray(params["a_b2"])[0]
    slab[ROW_C_W1:ROW_C_W1 + D, :HIDDEN] = np.asarray(params["c_w1"])
    slab[ROW_C_B1, :HIDDEN] = np.asarray(params["c_b1"])[0]
    slab[ROW_C_W2:ROW_C_W2 + HIDDEN, :1] = np.asarray(params["c_w2"])
    slab[ROW_C_B2, :1] = np.asarray(params["c_b2"])[0]
    return jnp.asarray(slab)


def build_edge_selectors(src_np, dst_np):
    """One-hot selection matrix [S_src; S_dst] (2E, N): sel @ h gathers node rows."""
    num_edges = src_np.shape[0]
    sel = np.zeros((2 * num_edges, N), np.float32)
    sel[np.arange(num_edges), src_np] = 1.0
    sel[num_edges + np.arange(num_edges), dst_np] = 1.0
    return jnp.asarray(sel)


# ------------------------ pure-JAX reference ---------------------------
def reference_forward(params, x, adj, src_ids, dst_ids):
    feat = x @ params["gat_w"]
    heads = []
    for hd in range(HEADS):
        fh = feat[:, hd * HIDDEN:(hd + 1) * HIDDEN]
        el = jnp.sum(fh * params["attn_l"][hd][None, :], axis=1, keepdims=True)
        er = jnp.sum(fh * params["attn_r"][hd][None, :], axis=1, keepdims=True)
        e = el + er.T                                         # e[u, v]
        e = jnp.where(e > 0, e, NEG_SLOPE * e)
        e = jnp.where(adj > 0, e, -1e30)
        m = jnp.max(e, axis=0, keepdims=True)
        p = jnp.exp(e - m) * adj
        alpha = p / jnp.sum(p, axis=0, keepdims=True)
        heads.append(alpha.T @ fh)
    rst = jnp.concatenate(heads, axis=1) + params["gat_b"]
    h = jnp.where(rst > 0, rst, jnp.exp(rst) - 1.0)
    edge_feat = jnp.concatenate([h[src_ids], h[dst_ids]], axis=1)
    z = jnp.maximum(edge_feat @ params["a_w1"] + params["a_b1"], 0.0)
    edge_logits = z @ params["a_w2"] + params["a_b2"]
    g = jnp.mean(h, axis=0, keepdims=True)
    zc = jnp.maximum(g @ params["c_w1"] + params["c_b1"], 0.0)
    state_value = jnp.mean(zc @ params["c_w2"] + params["c_b2"])
    return edge_logits, state_value


if __name__ == "__main__":
    key = jax.random.PRNGKey(0)
    ks = jax.random.split(key, 12)

    # deterministic parameter init (synthetic, not a checkpoint)
    params = {
        "gat_w":  0.1 * jax.random.normal(ks[0], (IN_FEATS, D), jnp.float32),
        "attn_l": 0.1 * jax.random.normal(ks[1], (HEADS, HIDDEN), jnp.float32),
        "attn_r": 0.1 * jax.random.normal(ks[2], (HEADS, HIDDEN), jnp.float32),
        "gat_b":  0.1 * jax.random.normal(ks[3], (1, D), jnp.float32),
        "a_w1":   0.1 * jax.random.normal(ks[4], (2 * D, HIDDEN), jnp.float32),
        "a_b1":   0.1 * jax.random.normal(ks[5], (1, HIDDEN), jnp.float32),
        "a_w2":   0.1 * jax.random.normal(ks[6], (HIDDEN, NUM_ACTIONS), jnp.float32),
        "a_b2":   0.1 * jax.random.normal(ks[7], (1, NUM_ACTIONS), jnp.float32),
        "c_w1":   0.1 * jax.random.normal(ks[8], (D, HIDDEN), jnp.float32),
        "c_b1":   0.1 * jax.random.normal(ks[9], (1, HIDDEN), jnp.float32),
        "c_w2":   0.1 * jax.random.normal(ks[10], (HIDDEN, 1), jnp.float32),
        "c_b2":   0.1 * jax.random.normal(ks[11], (1, 1), jnp.float32),
    }

    # deterministic small graph: ring edges + self loops (every node has in-degree >= 1)
    src_np = np.concatenate([np.arange(N), np.arange(N)]).astype(np.int32)
    dst_np = np.concatenate([(np.arange(N) + 1) % N, np.arange(N)]).astype(np.int32)
    src_ids = jnp.asarray(src_np)
    dst_ids = jnp.asarray(dst_np)
    adj_np = np.zeros((N, N), np.float32)
    adj_np[src_np, dst_np] = 1.0                      # adj[u, v] = 1 for edge u -> v
    adj = jnp.asarray(adj_np)                         # reference layout
    adj_t = jnp.asarray(adj_np.T.copy())              # kernel layout: adj_t[v, u]

    node_features = jax.random.normal(jax.random.PRNGKey(42), (N, IN_FEATS), jnp.float32)

    # host-side one-time packing (single parameter slab, one-hot edge selectors)
    param_slab = pack_params(params)
    sel = build_edge_selectors(src_np, dst_np)

    edge_logits, state_value = actor_critic_forward(node_features, param_slab, adj_t, sel)
    jax.block_until_ready((edge_logits, state_value))

    ref_logits, ref_value = reference_forward(params, node_features, adj, src_ids, dst_ids)
    assert edge_logits.shape == (E, NUM_ACTIONS)
    assert np.allclose(np.asarray(edge_logits), np.asarray(ref_logits), rtol=1e-4, atol=1e-4)
    assert np.allclose(float(state_value), float(ref_value), rtol=1e-4, atol=1e-4)

    print("KERNEL_OK")
</pallas_src>

<mosaic_0001>
module attributes {stable_mosaic.version = 11 : i64} {
  func.func @fused_kernel(%arg0: memref<16x8xf32, #tpu.memory_space<vmem>>, %arg1: memref<136x16xf32, #tpu.memory_space<vmem>>, %arg2: memref<16x16xf32, #tpu.memory_space<vmem>>, %arg3: memref<64x16xf32, #tpu.memory_space<vmem>>, %arg4: memref<32x4xf32, #tpu.memory_space<vmem>>, %arg5: memref<1x1xf32, #tpu.memory_space<vmem>>) attributes {dimension_semantics = [], scalar_prefetch = 0 : i64, scratch_operands = 0 : i64, tpu.core_type = #tpu.core_type<tc>} {
    %c0 = arith.constant 0 : index
    %c0_0 = arith.constant 0 : index
    %0 = vector.load %arg0[%c0, %c0_0] : memref<16x8xf32, #tpu.memory_space<vmem>>, vector<16x8xf32>
    %c0_1 = arith.constant 0 : index
    %c0_2 = arith.constant 0 : index
    %1 = vector.load %arg2[%c0_1, %c0_2] : memref<16x16xf32, #tpu.memory_space<vmem>>, vector<16x16xf32>
    %c0_3 = arith.constant 0 : index
    %c0_4 = arith.constant 0 : index
    %2 = vector.load %arg3[%c0_3, %c0_4] : memref<64x16xf32, #tpu.memory_space<vmem>>, vector<64x16xf32>
    %c0_5 = arith.constant 0 : index
    %c0_6 = arith.constant 0 : index
    %3 = vector.load %arg1[%c0_5, %c0_6] : memref<136x16xf32, #tpu.memory_space<vmem>>, vector<8x16xf32>
    %cst = arith.constant dense<0.000000e+00> : vector<16x16xf32>
    %4 = tpu.matmul %0, %3, %cst {dimension_numbers = #tpu.dot_dimension_numbers<[1], [0], [0], [1], [0, 0, 1, 1], [], []>} : vector<16x8xf32>, vector<8x16xf32>, vector<16x16xf32> -> vector<16x16xf32>
    %c16 = arith.constant 16 : index
    %c0_7 = arith.constant 0 : index
    %5 = vector.load %arg1[%c16, %c0_7] : memref<136x16xf32, #tpu.memory_space<vmem>>, vector<2x16xf32>
    %c24 = arith.constant 24 : index
    %c0_8 = arith.constant 0 : index
    %6 = vector.load %arg1[%c24, %c0_8] : memref<136x16xf32, #tpu.memory_space<vmem>>, vector<16x16xf32>
    %7 = vector.extract_strided_slice %6 {offsets = [0, 0], sizes = [16, 2], strides = [1, 1]} : vector<16x16xf32> to vector<16x2xf32>
    %cst_9 = arith.constant dense<0.000000e+00> : vector<16x2xf32>
    %8 = tpu.matmul %4, %7, %cst_9 {dimension_numbers = #tpu.dot_dimension_numbers<[1], [0], [0], [1], [0, 0, 1, 1], [], []>} : vector<16x16xf32>, vector<16x2xf32>, vector<16x2xf32> -> vector<16x2xf32>
    %cst_10 = arith.constant dense<0.000000e+00> : vector<2x16xf32>
    %9 = tpu.matmul %5, %4, %cst_10 {dimension_numbers = #tpu.dot_dimension_numbers<[1], [1], [0], [0], [0, 0, 1, 0], [], []>} : vector<2x16xf32>, vector<16x16xf32>, vector<2x16xf32> -> vector<2x16xf32>
    %10 = vector.extract_strided_slice %4 {offsets = [0, 0], sizes = [16, 8], strides = [1, 1]} : vector<16x16xf32> to vector<16x8xf32>
    %11 = vector.extract_strided_slice %8 {offsets = [0, 0], sizes = [16, 1], strides = [1, 1]} : vector<16x2xf32> to vector<16x1xf32>
    %12 = vector.extract_strided_slice %9 {offsets = [0, 0], sizes = [1, 16], strides = [1, 1]} : vector<2x16xf32> to vector<1x16xf32>
    %13 = vector.broadcast %11 : vector<16x1xf32> to vector<16x16xf32>
    %14 = vector.broadcast %12 : vector<1x16xf32> to vector<16x16xf32>
    %15 = arith.addf %13, %14 : vector<16x16xf32>
    %cst_11 = arith.constant 0.000000e+00 : f32
    %16 = vector.broadcast %cst_11 : f32 to vector<16x16xf32>
    %17 = arith.cmpf ogt, %15, %16 : vector<16x16xf32>
    %cst_12 = arith.constant 2.000000e-01 : f32
    %18 = vector.broadcast %cst_12 : f32 to vector<16x16xf32>
    %19 = arith.mulf %18, %15 : vector<16x16xf32>
    %20 = arith.select %17, %15, %19 : vector<16x16xi1>, vector<16x16xf32>
    %cst_13 = arith.constant 0.000000e+00 : f32
    %21 = vector.broadcast %cst_13 : f32 to vector<16x16xf32>
    %22 = arith.cmpf ogt, %1, %21 : vector<16x16xf32>
    %cst_14 = arith.constant -1.000000e+30 : f32
    %23 = vector.broadcast %cst_14 : f32 to vector<16x16xf32>
    %24 = arith.select %22, %20, %23 : vector<16x16xi1>, vector<16x16xf32>
    %cst_15 = arith.constant dense<0xFF800000> : vector<16xf32>
    %25 = vector.multi_reduction <maximumf>, %24, %cst_15 [1] : vector<16x16xf32> to vector<16xf32>
    %26 = vector.shape_cast %25 : vector<16xf32> to vector<16x1xf32>
    %27 = vector.broadcast %26 : vector<16x1xf32> to vector<16x16xf32>
    %28 = arith.subf %24, %27 : vector<16x16xf32>
    %29 = math.exp %28 : vector<16x16xf32>
    %cst_16 = arith.constant dense<0.000000e+00> : vector<16xf32>
    %30 = vector.multi_reduction <add>, %29, %cst_16 [1] : vector<16x16xf32> to vector<16xf32>
    %31 = vector.shape_cast %30 : vector<16xf32> to vector<16x1xf32>
    %32 = vector.broadcast %31 : vector<16x1xf32> to vector<16x16xf32>
    %33 = arith.divf %29, %32 : vector<16x16xf32>
    %cst_17 = arith.constant dense<0.000000e+00> : vector<16x8xf32>
    %34 = tpu.matmul %33, %10, %cst_17 {dimension_numbers = #tpu.dot_dimension_numbers<[1], [0], [0], [1], [0, 0, 1, 1], [], []>} : vector<16x16xf32>, vector<16x8xf32>, vector<16x8xf32> -> vector<16x8xf32>
    %35 = vector.extract_strided_slice %4 {offsets = [0, 8], sizes = [16, 8], strides = [1, 1]} : vector<16x16xf32> to vector<16x8xf32>
    %36 = vector.extract_strided_slice %8 {offsets = [0, 1], sizes = [16, 1], strides = [1, 1]} : vector<16x2xf32> to vector<16x1xf32>
    %37 = vector.extract_strided_slice %9 {offsets = [1, 0], sizes = [1, 16], strides = [1, 1]} : vector<2x16xf32> to vector<1x16xf32>
    %38 = vector.broadcast %36 : vector<16x1xf32> to vector<16x16xf32>
    %39 = vector.broadcast %37 : vector<1x16xf32> to vector<16x16xf32>
    %40 = arith.addf %38, %39 : vector<16x16xf32>
    %cst_18 = arith.constant 0.000000e+00 : f32
    %41 = vector.broadcast %cst_18 : f32 to vector<16x16xf32>
    %42 = arith.cmpf ogt, %40, %41 : vector<16x16xf32>
    %cst_19 = arith.constant 2.000000e-01 : f32
    %43 = vector.broadcast %cst_19 : f32 to vector<16x16xf32>
    %44 = arith.mulf %43, %40 : vector<16x16xf32>
    %45 = arith.select %42, %40, %44 : vector<16x16xi1>, vector<16x16xf32>
    %cst_20 = arith.constant 0.000000e+00 : f32
    %46 = vector.broadcast %cst_20 : f32 to vector<16x16xf32>
    %47 = arith.cmpf ogt, %1, %46 : vector<16x16xf32>
    %cst_21 = arith.constant -1.000000e+30 : f32
    %48 = vector.broadcast %cst_21 : f32 to vector<16x16xf32>
    %49 = arith.select %47, %45, %48 : vector<16x16xi1>, vector<16x16xf32>
    %cst_22 = arith.constant dense<0xFF800000> : vector<16xf32>
    %50 = vector.multi_reduction <maximumf>, %49, %cst_22 [1] : vector<16x16xf32> to vector<16xf32>
    %51 = vector.shape_cast %50 : vector<16xf32> to vector<16x1xf32>
    %52 = vector.broadcast %51 : vector<16x1xf32> to vector<16x16xf32>
    %53 = arith.subf %49, %52 : vector<16x16xf32>
    %54 = math.exp %53 : vector<16x16xf32>
    %cst_23 = arith.constant dense<0.000000e+00> : vector<16xf32>
    %55 = vector.multi_reduction <add>, %54, %cst_23 [1] : vector<16x16xf32> to vector<16xf32>
    %56 = vector.shape_cast %55 : vector<16xf32> to vector<16x1xf32>
    %57 = vector.broadcast %56 : vector<16x1xf32> to vector<16x16xf32>
    %58 = arith.divf %54, %57 : vector<16x16xf32>
    %cst_24 = arith.constant dense<0.000000e+00> : vector<16x8xf32>
    %59 = tpu.matmul %58, %35, %cst_24 {dimension_numbers = #tpu.dot_dimension_numbers<[1], [0], [0], [1], [0, 0, 1, 1], [], []>} : vector<16x16xf32>, vector<16x8xf32>, vector<16x8xf32> -> vector<16x8xf32>
    %c8 = arith.constant 8 : index
    %c0_25 = arith.constant 0 : index
    %60 = vector.load %arg1[%c8, %c0_25] : memref<136x16xf32, #tpu.memory_space<vmem>>, vector<1x16xf32>
    %61 = tpu.concatenate %34, %59 in 1 : vector<16x8xf32>, vector<16x8xf32> -> vector<16x16xf32>
    %62 = vector.broadcast %60 : vector<1x16xf32> to vector<16x16xf32>
    %63 = arith.addf %61, %62 : vector<16x16xf32>
    %cst_26 = arith.constant 0.000000e+00 : f32
    %64 = vector.broadcast %cst_26 : f32 to vector<16x16xf32>
    %65 = arith.cmpf ogt, %63, %64 : vector<16x16xf32>
    %66 = math.exp %63 : vector<16x16xf32>
    %cst_27 = arith.constant 1.000000e+00 : f32
    %67 = vector.broadcast %cst_27 : f32 to vector<16x16xf32>
    %68 = arith.subf %66, %67 : vector<16x16xf32>
    %69 = arith.select %65, %63, %68 : vector<16x16xi1>, vector<16x16xf32>
    %cst_28 = arith.constant dense<0.000000e+00> : vector<64x16xf32>
    %70 = tpu.matmul %2, %69, %cst_28 {dimension_numbers = #tpu.dot_dimension_numbers<[1], [0], [0], [1], [0, 0, 1, 1], [], []>} : vector<64x16xf32>, vector<16x16xf32>, vector<64x16xf32> -> vector<64x16xf32>
    %71 = vector.extract_strided_slice %70 {offsets = [0, 0], sizes = [32, 16], strides = [1, 1]} : vector<64x16xf32> to vector<32x16xf32>
    %72 = vector.extract_strided_slice %70 {offsets = [32, 0], sizes = [32, 16], strides = [1, 1]} : vector<64x16xf32> to vector<32x16xf32>
    %c40 = arith.constant 40 : index
    %c0_29 = arith.constant 0 : index
    %73 = vector.load %arg1[%c40, %c0_29] : memref<136x16xf32, #tpu.memory_space<vmem>>, vector<32x16xf32>
    %74 = vector.extract_strided_slice %73 {offsets = [0, 0], sizes = [32, 8], strides = [1, 1]} : vector<32x16xf32> to vector<32x8xf32>
    %c72 = arith.constant 72 : index
    %c0_30 = arith.constant 0 : index
    %75 = vector.load %arg1[%c72, %c0_30] : memref<136x16xf32, #tpu.memory_space<vmem>>, vector<1x16xf32>
    %76 = vector.extract_strided_slice %75 {offsets = [0, 0], sizes = [1, 8], strides = [1, 1]} : vector<1x16xf32> to vector<1x8xf32>
    %77 = vector.extract_strided_slice %74 {offsets = [0, 0], sizes = [16, 8], strides = [1, 1]} : vector<32x8xf32> to vector<16x8xf32>
    %cst_31 = arith.constant dense<0.000000e+00> : vector<32x8xf32>
    %78 = tpu.matmul %71, %77, %cst_31 {dimension_numbers = #tpu.dot_dimension_numbers<[1], [0], [0], [1], [0, 0, 1, 1], [], []>} : vector<32x16xf32>, vector<16x8xf32>, vector<32x8xf32> -> vector<32x8xf32>
    %79 = vector.extract_strided_slice %74 {offsets = [16, 0], sizes = [16, 8], strides = [1, 1]} : vector<32x8xf32> to vector<16x8xf32>
    %cst_32 = arith.constant dense<0.000000e+00> : vector<32x8xf32>
    %80 = tpu.matmul %72, %79, %cst_32 {dimension_numbers = #tpu.dot_dimension_numbers<[1], [0], [0], [1], [0, 0, 1, 1], [], []>} : vector<32x16xf32>, vector<16x8xf32>, vector<32x8xf32> -> vector<32x8xf32>
    %81 = arith.addf %78, %80 : vector<32x8xf32>
    %82 = vector.broadcast %76 : vector<1x8xf32> to vector<32x8xf32>
    %83 = arith.addf %81, %82 : vector<32x8xf32>
    %cst_33 = arith.constant 0.000000e+00 : f32
    %84 = vector.broadcast %cst_33 : f32 to vector<32x8xf32>
    %85 = arith.maximumf %83, %84 : vector<32x8xf32>
    %c80 = arith.constant 80 : index
    %c0_34 = arith.constant 0 : index
    %86 = vector.load %arg1[%c80, %c0_34] : memref<136x16xf32, #tpu.memory_space<vmem>>, vector<8x16xf32>
    %87 = vector.extract_strided_slice %86 {offsets = [0, 0], sizes = [8, 4], strides = [1, 1]} : vector<8x16xf32> to vector<8x4xf32>
    %c88 = arith.constant 88 : index
    %c0_35 = arith.constant 0 : index
    %88 = vector.load %arg1[%c88, %c0_35] : memref<136x16xf32, #tpu.memory_space<vmem>>, vector<1x16xf32>
    %89 = vector.extract_strided_slice %88 {offsets = [0, 0], sizes = [1, 4], strides = [1, 1]} : vector<1x16xf32> to vector<1x4xf32>
    %cst_36 = arith.constant dense<0.000000e+00> : vector<32x4xf32>
    %90 = tpu.matmul %85, %87, %cst_36 {dimension_numbers = #tpu.dot_dimension_numbers<[1], [0], [0], [1], [0, 0, 1, 1], [], []>} : vector<32x8xf32>, vector<8x4xf32>, vector<32x4xf32> -> vector<32x4xf32>
    %91 = vector.broadcast %89 : vector<1x4xf32> to vector<32x4xf32>
    %92 = arith.addf %90, %91 : vector<32x4xf32>
    %c0_37 = arith.constant 0 : index
    %c0_38 = arith.constant 0 : index
    %93 = vector.load %arg4[%c0_37, %c0_38] : memref<32x4xf32, #tpu.memory_space<vmem>>, vector<32x4xf32>
    tpu.vector_store %arg4[%c0_37, %c0_38], %92 {strides = array<i32>} : memref<32x4xf32, #tpu.memory_space<vmem>>, vector<32x4xf32>,
    %cst_39 = arith.constant dense<0.000000e+00> : vector<16xf32>
    %94 = vector.multi_reduction <add>, %69, %cst_39 [0] : vector<16x16xf32> to vector<16xf32>
    %95 = vector.shape_cast %94 : vector<16xf32> to vector<1x16xf32>
    %cst_40 = arith.constant 6.250000e-02 : f32
    %96 = vector.broadcast %cst_40 : f32 to vector<1x16xf32>
    %97 = arith.mulf %95, %96 : vector<1x16xf32>
    %c96 = arith.constant 96 : index
    %c0_41 = arith.constant 0 : index
    %98 = vector.load %arg1[%c96, %c0_41] : memref<136x16xf32, #tpu.memory_space<vmem>>, vector<16x16xf32>
    %99 = vector.extract_strided_slice %98 {offsets = [0, 0], sizes = [16, 8], strides = [1, 1]} : vector<16x16xf32> to vector<16x8xf32>
    %c112 = arith.constant 112 : index
    %c0_42 = arith.constant 0 : index
    %100 = vector.load %arg1[%c112, %c0_42] : memref<136x16xf32, #tpu.memory_space<vmem>>, vector<1x16xf32>
    %101 = vector.extract_strided_slice %100 {offsets = [0, 0], sizes = [1, 8], strides = [1, 1]} : vector<1x16xf32> to vector<1x8xf32>
    %cst_43 = arith.constant dense<0.000000e+00> : vector<1x8xf32>
    %102 = tpu.matmul %97, %99, %cst_43 {dimension_numbers = #tpu.dot_dimension_numbers<[1], [0], [0], [1], [0, 0, 1, 1], [], []>} : vector<1x16xf32>, vector<16x8xf32>, vector<1x8xf32> -> vector<1x8xf32>
    %103 = arith.addf %102, %101 : vector<1x8xf32>
    %cst_44 = arith.constant 0.000000e+00 : f32
    %104 = vector.broadcast %cst_44 : f32 to vector<1x8xf32>
    %105 = arith.maximumf %103, %104 : vector<1x8xf32>
    %c120 = arith.constant 120 : index
    %c0_45 = arith.constant 0 : index
    %106 = vector.load %arg1[%c120, %c0_45] : memref<136x16xf32, #tpu.memory_space<vmem>>, vector<8x16xf32>
    %107 = vector.extract_strided_slice %106 {offsets = [0, 0], sizes = [8, 1], strides = [1, 1]} : vector<8x16xf32> to vector<8x1xf32>
    %c128 = arith.constant 128 : index
    %c0_46 = arith.constant 0 : index
    %108 = vector.load %arg1[%c128, %c0_46] : memref<136x16xf32, #tpu.memory_space<vmem>>, vector<1x16xf32>
    %109 = vector.extract_strided_slice %108 {offsets = [0, 0], sizes = [1, 1], strides = [1, 1]} : vector<1x16xf32> to vector<1x1xf32>
    %cst_47 = arith.constant dense<0.000000e+00> : vector<1x1xf32>
    %110 = tpu.matmul %105, %107, %cst_47 {dimension_numbers = #tpu.dot_dimension_numbers<[1], [0], [0], [1], [0, 0, 1, 1], [], []>} : vector<1x8xf32>, vector<8x1xf32>, vector<1x1xf32> -> vector<1x1xf32>
    %111 = arith.addf %110, %109 : vector<1x1xf32>
    %c0_48 = arith.constant 0 : index
    %c0_49 = arith.constant 0 : index
    %112 = vector.load %arg5[%c0_48, %c0_49] : memref<1x1xf32, #tpu.memory_space<vmem>>, vector<1x1xf32>
    tpu.vector_store %arg5[%c0_48, %c0_49], %111 {strides = array<i32>} : memref<1x1xf32, #tpu.memory_space<vmem>>, vector<1x1xf32>,
    return
  }
}

</mosaic_0001>

<bundles_post_ra>
// kernel: actor_critic_forward.1
= control target key start
LH: loop header
LB: loop body
LE: loop exit
PB: predicated region body
PF: predicated region fallthrough
CT: control target
= control target key end

     0   :  { %vm33_vm0 = vcmask 64512   ;;  %s1634_s0 = inlined_call_operand.vmem [shape: f32[16,8], index: 0, kind: input, shape index: {}]   ;;  %s1635_s1 = inlined_call_operand.vmem [shape: f32[136,16], index: 1, kind: input, shape index: {}]   ;;  %s1636_s2 = inlined_call_operand.vmem [shape: f32[16,16], index: 2, kind: input, shape index: {}]   ;;  %s1637_s3 = inlined_call_operand.vmem [shape: f32[64,16], index: 3, kind: input, shape index: {}]   ;;  %s1638_s4 = inlined_call_operand.vmem [shape: f32[32,4], index: 4, kind: output, shape index: {0}]   ;;  %s1639_s5 = inlined_call_operand.hbm [shape: f32[1,1], index: 5, kind: output, shape index: {1}]  }
   0x1   :  { %v32_v0 = vld [vmem:[%s1635_s1] sm:$0xff]  ;;  %v21_v2 = vld [vmem:[%s1634_s0 + $0x8] sm:$0xff]  ;;  %v116_v4 = vld [vmem:[%s1635_s1 + $0x18] sm:$0xff] }
   0x2   :  { %v20_v1 = vld [vmem:[%s1634_s0] sm:$0xff]  ;;  %1278 = vmatprep.subr.mxu0 %v32_v0 }
   0x3   :  { %1280 = vmatprep.mubr.msk.f32.mxu0 %vm33_vm0, %v20_v1  ;;  %v117_v3 = vld [vmem:[%s1635_s1 + $0x20] sm:$0xff] }
   0x4   :  { %11 = vsyncpa [#allocation3], 0  ;;  %1279 = vmatpush3.msra.mxu0 %v32_v0  ;;  %1283 = vmatprep.subr.mxu1 %v117_v3  ;;  %v1419_v5 = vmov 0.0   ;;  %vm1420_vm1 = vmmov 0   ;;  %vm118_vm2 = vcmask 130048   ;;  %v1421_v9 = vmov 1  }
   0x5   :  { %1281 = vmatmul.mubr.msk.f32.vlgmr.msra.gmra.mxu0 %vm33_vm0, %v21_v2  ;;  %1284 = vmatpush3.msra.mxu1 %v117_v3  ;;  %v115_v8 = vld [vmem:[%s1635_s1 + $0x10] sm:$0x3]  ;;  %v1422_v10 = vmov 0   ;;  %v283_v15 = vlaneseq  ;;  %v22_v21 = vld [vmem:[%s1636_s2] sm:$0xff]  ;;  %v23_v30 = vld [vmem:[%s1636_s2 + $0x8] sm:$0xff]  ;;  %s1423_s2 = smov 120  }
   0x6   :  { %1285 = vmatprep.subr.mxu1 %v116_v4  ;;  %1290 = vmatprep.subr.mxu0 %v1419_v5  ;;  %vm295_vm3 = vcmp.gt.f32.partialorder %v22_v21, 0.0  ;;  %vm296_vm6 = vcmp.gt.f32.partialorder %v23_v30, 0.0  ;;  %s1424_s8 = smov 8   ;;  %vm1003_vm11 = vcmask 31744   ;;  %s1425_s23 = smov [#allocation2]   ;;  %vm1170_vm12 = vcmask 0  }
   0x7   :  { %1286 = vmatpush3.msra.mxu1 %v116_v4  ;;  %1294 = vmatprep.mubr.msk.f32.mxu0 %vm1420_vm1, %v1419_v5  ;;  %v284_v16 = vshrl.u32 %v283_v15, 7  ;;  %s1180_s24 = sshll.u32 %s1425_s23, 4  ;;  %s1181_s24 = int_to_ptr.vmem [resolvable:$true] %s1180_s24 }
   0x8   :  { %1375 = vset.pattern.permute.xlu1 %v1421_v9  ;;  %1374 = vset.pattern.permute.xlu0 %v1422_v10  ;;  %s1397_s29 = scalar_lea.vmem %s1181_s24, 16  ;;  %s1401_s30 = scalar_lea.vmem %s1181_s24, 32 }
   0x9   :  { %v285_v17 = vsub.s32 0, %v284_v16  ;;  %v412_v18 = vsub.s32 1, %v284_v16  ;;  %p1398_p0 = scmp.ne.s32.totalorder %s1181_s24, %s1397_s29  ;;  %p1402_p1 = scmp.lt.s32.totalorder %s1181_s24, %s1181_s24 }
   0xa   :  { %p1403_p2 = scmp.lt.s32.totalorder %s1401_s30, %s1397_s29 }
   0xc   :  { %p1404_p3 = por %p1403_p2, %p1402_p1 }
   0xe   :  { %p1405_p4 = pnand %p1404_p3, %p1398_p0 }
  0xc5   :  { %v1476_v6 = vpop.f32.mrf.mxu0 }
  0xc6   :  { %1291 = vmatpush3.xpose.msk.msra.mxu0 %vm118_vm2, %v1476_v6  ;;  %1297 = vmatprep.subr.mxu1 %v1476_v6 }
  0xc7   :  { %v1481_v7 = vpop.f32.mrf.mxu0  ;;  %1292 = vmatprep.subr.mxu0 %v1419_v5 }
  0xc8   :  { %1287 = vmatprep.mubr.msk.f32.mxu1 %vm118_vm2, %v1481_v7 }
  0xc9   :  { %1288 = vmatmul.mubr.msk.f32.vlgmr.msra.gmra.mxu1 %vm118_vm2, %v1476_v6 }
  0xca   :  { %1298 = vmatpush3.msra.mxu1 %v1476_v6  ;;  %1293 = vmatpush3.xpose.msk.msra.mxu0 %vm118_vm2, %v1481_v7 }
  0xcb   :  { %1299 = vmatprep.subr.mxu1 %v1481_v7 }
  0xcc   :  { %1300 = vmatpush3.msra.mxu1 %v1481_v7 }
  0xcd   :  { %1295 = vmatmul.mubr.msk.f32.vlgmr.msra.gmra.mxu0 %vm118_vm2, %v115_v8 }
 0x189   :  { %v1289_v11 = vpop.f32.mrf.mxu1 }
 0x18b   :  { %v191_v12 = vpop.f32.mrf.mxu1 }
 0x18c   :  { %403 = vperm.xlu1 %1375, %v191_v12   ;;  %275 = vperm.xlu0 %1374, %v191_v12  }
 0x18d   :  { %v269_v13 = vpop.f32.mrf.mxu0 }
 0x18e   :  { %v286_v19 = vrot.slane %v269_v13, %v285_v17  ;;  %v413_v20 = vrot.slane %v269_v13, %v412_v18 }
 0x18f   :  { %v1296_v14 = vpop.f32.mrf.mxu0 }
 0x190   :  { %407 = vperm.xlu1 %1375, %v1289_v11   ;;  %280 = vperm.xlu0 %1374, %v1289_v11  }
 0x194   :  { %1376 = vset.pattern.permute.xlu0 %v1421_v9 }
 0x207   :  { %v404_v22 = vpop.permute.xlu1 %403  ;;  %v276_v23 = vpop.permute.xlu0 %275 }
 0x208   :  { %v414_v24 = vadd.f32 %v413_v20, %v404_v22  ;;  %v287_v25 = vadd.f32 %v286_v19, %v276_v23  ;;  %v24_v22 = vld [vmem:[%s1637_s3] sm:$0xff]  ;;  %v1201_v23 = vld [vmem:[%s1635_s1 + $0x8] ss:$0 sm:$0xff] }
 0x209   :  { %1315 = vmatprep.mubr.msk.f32.mxu0 %vm118_vm2, %v24_v22 }
 0x20a   :  { %v418_v26 = vmul.f32 0.2, %v414_v24  ;;  %v291_v27 = vmul.f32 0.2, %v287_v25  ;;  %vm289_vm4 = vcmp.gt.f32.partialorder %v287_v25, 0.0  ;;  %vm416_vm5 = vcmp.gt.f32.partialorder %v414_v24, 0.0 }
 0x20b   :  { %v408_v28 = vpop.permute.xlu1 %407  ;;  %v281_v29 = vpop.permute.xlu0 %280 }
 0x20c   :  { %v415_v31 = vadd.f32 %v413_v20, %v408_v28  ;;  %v288_v32 = vadd.f32 %v286_v19, %v281_v29  ;;  %v293_v33 = vsel %vm289_vm4, %v287_v25, %v291_v27  ;;  %v420_v34 = vsel %vm416_vm5, %v414_v24, %v418_v26 }
 0x20d   :  { %v297_v35 = vsel %vm295_vm3, %v293_v33, -1e+30  ;;  %v422_v39 = vsel %vm295_vm3, %v420_v34, -1e+30 }
 0x20e   :  { %v419_v36 = vmul.f32 0.2, %v415_v31  ;;  %v292_v37 = vmul.f32 0.2, %v288_v32  ;;  %v299_v38 = vsel %vm118_vm2, %v297_v35, -inf  ;;  %vm290_vm7 = vcmp.gt.f32.partialorder %v288_v32, 0.0 }
 0x20f   :  { %300 = vmax.xlane.f32.xlu0 %v299_v38  ;;  %vm417_vm8 = vcmp.gt.f32.partialorder %v415_v31, 0.0  ;;  %v424_v43 = vsel %vm118_vm2, %v422_v39, -inf  ;;  %v25_v38 = vld [vmem:[%s1637_s3 + $0x8] sm:$0xff] }
 0x210   :  { %v294_v40 = vsel %vm290_vm7, %v288_v32, %v292_v37  ;;  %v421_v41 = vsel %vm417_vm8, %v415_v31, %v419_v36 }
 0x211   :  { %v298_v42 = vsel %vm296_vm6, %v294_v40, -1e+30  ;;  %v423_v45 = vsel %vm296_vm6, %v421_v41, -1e+30  ;;  %v26_v41 = vld [vmem:[%s1637_s3 + $0x10] sm:$0xff] }
 0x212   :  { %v302_v44 = vsel %vm118_vm2, %v298_v42, -inf  ;;  %v427_v46 = vsel %vm118_vm2, %v423_v45, -inf }
 0x213   :  { %425 = vmax.xlane.f32.xlu0 %v424_v43  ;;  %303 = vmax.xlane.f32.xlu1 %v302_v44  ;;  %v27_v43 = vld [vmem:[%s1637_s3 + $0x18] sm:$0xff]  ;;  %v28_v44 = vld [vmem:[%s1637_s3 + $0x20] sm:$0xff] }
 0x217   :  { %428 = vmax.xlane.f32.xlu0 %v427_v46  ;;  %v30_v46 = vld [vmem:[%s1637_s3 + $0x30] sm:$0xff] }
 0x298   :  { %v301_v47 = vpop.xlane.xlu0 %300 }
 0x299   :  { %v305_v48 = vsub.f32 %v297_v35, %v301_v47  ;;  %v31_v47 = vld [vmem:[%s1637_s3 + $0x38] sm:$0xff] }
 0x29b   :  { %v307_v49 = vmul.f32 1.442695, %v305_v48  ;;  %v692_v48 = vld [vmem:[%s1635_s1 + $0x40] sm:$0xff] }
 0x29c   :  { %v304_v50 = vpop.xlane.xlu1 %303  ;;  %v426_v51 = vpop.xlane.xlu0 %425 }
 0x29d   :  { %1377 = vpow2.f32 %v307_v49  ;;  %v306_v52 = vsub.f32 %v298_v42, %v304_v50  ;;  %v430_v53 = vsub.f32 %v422_v39, %v426_v51  ;;  %v691_v49 = vld [vmem:[%s1635_s1 + $0x38] sm:$0xff]  ;;  %v690_v50 = vld [vmem:[%s1635_s1 + $0x30] sm:$0xff] }
 0x29f   :  { %v309_v54 = vmul.f32 1.442695, %v306_v52  ;;  %v432_v55 = vmul.f32 1.442695, %v430_v53 }
 0x2a0   :  { %v429_v56 = vpop.xlane.xlu0 %428 }
 0x2a1   :  { %1379 = vpow2.f32 %v309_v54  ;;  %v431_v57 = vsub.f32 %v423_v45, %v429_v56  ;;  %v29_v45 = vld [vmem:[%s1637_s3 + $0x28] sm:$0xff] }
 0x2a2   :  { %1381 = vpow2.f32 %v432_v55 }
 0x2a3   :  { %v434_v58 = vmul.f32 1.442695, %v431_v57 }
 0x2a5   :  { %1383 = vpow2.f32 %v434_v58 }
 0x2aa   :  { %v1378_v59 = vpop.eup %1377 }
 0x2ab   :  { %v311_v60 = vsel %vm118_vm2, %v1378_v59, 0.0 }
 0x2ac   :  { %312 = vadd.xlane.f32.xlu1 %v311_v60  ;;  %v689_v60 = vld [vmem:[%s1635_s1 + $0x28] sm:$0xff] }
 0x2ae   :  { %v1380_v61 = vpop.eup %1379 }
 0x2af   :  { %v1382_v62 = vpop.eup %1381  ;;  %v314_v63 = vsel %vm118_vm2, %v1380_v61, 0.0 }
 0x2b0   :  { %315 = vadd.xlane.f32.xlu0 %v314_v63  ;;  %v436_v0 = vsel %vm118_vm2, %v1382_v62, 0.0 }
 0x2b1   :  { %437 = vadd.xlane.f32.xlu1 %v436_v0 }
 0x2b2   :  { %v1384_v1 = vpop.eup %1383 }
 0x2b3   :  { %v439_v2 = vsel %vm118_vm2, %v1384_v1, 0.0 }
 0x2b4   :  { %440 = vadd.xlane.f32.xlu0 %v439_v2  ;;  %v1018_v2 = vld [vmem:[%s1635_s1 + $0x60] sm:$0xff] }
 0x2c2   :  { %448 = vrot.lane.b32.xlu1 %v1476_v6, %s1423_s2 }
 0x2ca   :  { %446 = vrot.lane.b32.xlu0 %v1481_v7, %s1423_s2 }
 0x335   :  { %v313_v3 = vpop.xlane.xlu1 %312 }
 0x336   :  { %1385 = vrcp.f32 %v313_v3 }
 0x339   :  { %v316_v4 = vpop.xlane.xlu0 %315 }
 0x33a   :  { %v438_v8 = vpop.xlane.xlu1 %437  ;;  %1387 = vrcp.f32 %v316_v4 }
 0x33b   :  { %1389 = vrcp.f32 %v438_v8  ;;  %v900_v8 = vld [vmem:[%s1635_s1 + $0x50] sm:$0xff] }
 0x33d   :  { %v441_v9 = vpop.xlane.xlu0 %440 }
 0x33e   :  { %v449_v10 = vpop.permute.xlu1 %448  ;;  %1391 = vrcp.f32 %v441_v9  ;;  %v1095_v9 = vld [vmem:[%s1635_s1 + $0x78] sm:$0xff] }
 0x33f   :  { %1304 = vmatprep.subr.mxu1 %v449_v10 }
 0x341   :  { %v447_v16 = vpop.permute.xlu0 %446 }
 0x343   :  { %v1386_v11 = vpop.eup %1385 }
 0x344   :  { %v318_v12 = vmul.f32 %v1386_v11, %v1378_v59 }
 0x346   :  { %1301 = vmatprep.mubr.msk.f32.mxu1 %vm118_vm2, %v318_v12 }
 0x347   :  { %v1388_v13 = vpop.eup %1387 }
 0x348   :  { %v1390_v14 = vpop.eup %1389  ;;  %v320_v15 = vmul.f32 %v1388_v13, %v1380_v61 }
 0x349   :  { %v443_v6 = vmul.f32 %v1390_v14, %v1382_v62 }
 0x34a   :  { %1302 = vmatmul.mubr.msk.f32.vlgmr.msra.gmra.mxu1 %vm118_vm2, %v320_v15 }
 0x34b   :  { %v1392_v7 = vpop.eup %1391  ;;  %1305 = vmatpush3.msra.mxu1 %v449_v10  ;;  %1308 = vmatprep.mubr.msk.f32.mxu1 %vm118_vm2, %v443_v6 }
 0x34c   :  { %1306 = vmatprep.subr.mxu1 %v447_v16  ;;  %v445_v17 = vmul.f32 %v1392_v7, %v1384_v1  ;;  %v1019_v1 = vld [vmem:[%s1635_s1 + $0x68] sm:$0xff] }
 0x34d   :  { %1307 = vmatpush3.msra.mxu1 %v447_v16 }
 0x34e   :  { %1309 = vmatmul.mubr.msk.f32.vlgmr.msra.gmra.mxu1 %vm118_vm2, %v445_v17  ;;  %1327 = vmatprep.subr.mxu1 %v692_v48 }
 0x34f   :  { %1328 = vmatpush3.msra.mxu1 %v692_v48 }
 0x350   :  { %1329 = vmatprep.subr.mxu1 %v691_v49 }
 0x351   :  { %1330 = vmatpush3.msra.mxu1 %v691_v49 }
 0x352   :  { %1337 = vmatprep.subr.mxu1 %v690_v50 }
 0x40a   :  { %v1303_v18 = vpop.f32.mrf.mxu1 }
 0x40c   :  { %v393_v19 = vpop.f32.mrf.mxu1 }
 0x40e   :  { %v1310_v20 = vpop.f32.mrf.mxu1 }
 0x40f   :  { %538 = vrot.lane.b32.xlu1 %v1310_v20, %s1424_s8 }
 0x410   :  { %v524_v21 = vpop.f32.mrf.mxu1 }
 0x413   :  { %536 = vrot.lane.b32.xlu1 %v524_v21, %s1424_s8  ;;  %v1020_v21 = vld [vmem:[%s1635_s1 + $0x70] sm:$0x1] }
 0x481   :  { %v539_v24 = vpop.permute.xlu1 %538 }
 0x482   :  { %v543_v25 = vsel %vm33_vm0, %v1303_v18, %v539_v24 }
 0x483   :  { %v549_v26 = vadd.f32 %v1201_v23, %v543_v25 }
 0x485   :  { %v554_v27 = vmul.f32 1.442695, %v549_v26  ;;  %v537_v28 = vpop.permute.xlu1 %536  ;;  %vm551_vm9 = vcmp.gt.f32.partialorder %v549_v26, 0.0 }
 0x486   :  { %v542_v29 = vsel %vm33_vm0, %v393_v19, %v537_v28 }
 0x487   :  { %1393 = vpow2.f32 %v554_v27  ;;  %v548_v30 = vadd.f32 %v1201_v23, %v542_v29 }
 0x489   :  { %v552_v31 = vmul.f32 1.442695, %v548_v30  ;;  %vm550_vm10 = vcmp.gt.f32.partialorder %v548_v30, 0.0 }
 0x48b   :  { %1395 = vpow2.f32 %v552_v31 }
 0x494   :  { %v1394_v32 = vpop.eup %1393 }
 0x495   :  { %v1203_v33 = vadd.f32 -1.0, %v1394_v32 }
 0x497   :  { %v559_v34 = vsel %vm551_vm9, %v549_v26, %v1203_v33  ;;  %v1221_v33 = vld [vmem:[%s1635_s1 + $0x58] ss:$0 sm:$0xff] }
 0x498   :  { %v1396_v35 = vpop.eup %1395  ;;  %1311 = vmatprep.subr.mxu0 %v559_v34  ;;  %v1009_v39 = vsel %vm118_vm2, %v559_v34, 0.0 }
 0x499   :  { %1312 = vmatpush3.msra.mxu0 %v559_v34  ;;  %v1202_v36 = vadd.f32 -1.0, %v1396_v35 }
 0x49b   :  { %v558_v37 = vsel %vm550_vm10, %v548_v30, %v1202_v36  ;;  %v1096_v36 = vld [vmem:[%s1635_s1 + $0x80] sm:$0x1] }
 0x49c   :  { %1313 = vmatprep.subr.mxu0 %v558_v37  ;;  %v1008_v40 = vsel %vm118_vm2, %v558_v37, 0.0 }
 0x49d   :  { %v1010_v42 = vadd.f32 %v1009_v39, %v1008_v40  ;;  %1314 = vmatpush3.msra.mxu0 %v558_v37 }
 0x49e   :  { %1316 = vmatmul.mubr.msk.f32.vlgmr.msra.gmra.mxu0 %vm118_vm2, %v25_v38  ;;  %1347 = vmatprep.subr.mxu0 %v900_v8 }
 0x49f   :  { %1318 = vmatprep.mubr.msk.f32.mxu0 %vm118_vm2, %v26_v41  ;;  %v1011_v52 = vrot.slane %v1010_v42, 4  ;;  %1348 = vmatpush3.msra.mxu0 %v900_v8 }
 0x4a1   :  { %v1012_v55 = vadd.f32 %v1011_v52, %v1010_v42 }
 0x4a2   :  { %1319 = vmatmul.mubr.msk.f32.gmra.mxu0 %vm118_vm2, %v27_v43 }
 0x4a3   :  { %1321 = vmatprep.mubr.msk.f32.mxu0 %vm118_vm2, %v28_v44  ;;  %v1013_v58 = vrot.slane %v1012_v55, 2 }
 0x4a5   :  { %v1014_v62 = vadd.f32 %v1013_v58, %v1012_v55 }
 0x4a6   :  { %1322 = vmatmul.mubr.msk.f32.gmra.mxu0 %vm118_vm2, %v29_v45 }
 0x4a7   :  { %1324 = vmatprep.mubr.msk.f32.mxu0 %vm118_vm2, %v30_v46  ;;  %v1015_v0 = vrot.slane %v1014_v62, 1 }
 0x4a9   :  { %v1016_v3 = vadd.f32 %v1015_v0, %v1014_v62 }
 0x4aa   :  { %1325 = vmatmul.mubr.msk.f32.gmra.mxu0 %vm118_vm2, %v31_v47 }
 0x4ab   :  { %v1017_v4 = vmul.f32 0.0625, %v1016_v3 }
 0x55e   :  { %v1317_v51 = vpop.f32.mrf.mxu0 }
 0x560   :  { %v650_v53 = vpop.f32.mrf.mxu0 }
 0x562   :  { %v1320_v54 = vpop.f32.mrf.mxu0 }
 0x564   :  { %v660_v56 = vpop.f32.mrf.mxu0 }
 0x566   :  { %v1323_v57 = vpop.f32.mrf.mxu0 }
 0x568   :  { %v670_v59 = vpop.f32.mrf.mxu0 }
 0x569   :  { %1331 = vmatprep.mubr.msk.f32.mxu1 %vm118_vm2, %v670_v59 }
 0x56a   :  { %v1326_v61 = vpop.f32.mrf.mxu0  ;;  %1332 = vmatmul.mubr.msk.f32.vlgmr.msra.gmra.mxu1 %vm118_vm2, %v1323_v57 }
 0x56b   :  { %1338 = vmatpush3.msra.mxu1 %v690_v50 }
 0x56c   :  { %v680_v63 = vpop.f32.mrf.mxu0  ;;  %1339 = vmatprep.subr.mxu1 %v689_v60 }
 0x56d   :  { %1334 = vmatprep.mubr.msk.f32.mxu1 %vm118_vm2, %v680_v63  ;;  %1340 = vmatpush3.msra.mxu1 %v689_v60 }
 0x56e   :  { %1335 = vmatmul.mubr.msk.f32.gmra.mxu1 %vm118_vm2, %v1326_v61  ;;  %1355 = vmatprep.subr.mxu1 %v1419_v5 }
 0x56f   :  { %1341 = vmatprep.mubr.msk.f32.mxu1 %vm118_vm2, %v650_v53 }
 0x572   :  { %1342 = vmatmul.mubr.msk.f32.vlgmr.msra.gmra.mxu1 %vm118_vm2, %v1317_v51 }
 0x573   :  { %1344 = vmatprep.mubr.msk.f32.mxu1 %vm118_vm2, %v660_v56  ;;  %1356 = vmatpush3.msra.mxu1 %v1019_v1 }
 0x574   :  { %1357 = vmatprep.subr.mxu1 %v1419_v5 }
 0x575   :  { %1358 = vmatpush3.msra.mxu1 %v1018_v2 }
 0x576   :  { %1345 = vmatmul.mubr.msk.f32.gmra.mxu1 %vm118_vm2, %v1320_v54  ;;  %1362 = vmatprep.subr.mxu1 %v1419_v5 }
 0x577   :  { %1359 = vmatprep.mubr.msk.f32.mxu1 %vm1420_vm1, %v1419_v5 }
 0x57a   :  { %1360 = vmatmul.mubr.msk.f32.vlgmr.msra.gmra.mxu1 %vm118_vm2, %v1017_v4 }
 0x57b   :  { %1364 = vmatprep.mubr.msk.f32.mxu1 %vm1420_vm1, %v1419_v5  ;;  %1363 = vmatpush3.msra.mxu1 %v1095_v9  ;;  %v1220_v5 = vld [vmem:[%s1635_s1 + $0x48] ss:$0 sm:$0xff] }
 0x62a   :  { %v1333_v10 = vpop.f32.mrf.mxu1 }
 0x62c   :  { %v772_v11 = vpop.f32.mrf.mxu1 }
 0x62e   :  { %v1336_v12 = vpop.f32.mrf.mxu1 }
 0x630   :  { %v782_v13 = vpop.f32.mrf.mxu1 }
 0x632   :  { %v1343_v14 = vpop.f32.mrf.mxu1 }
 0x633   :  { %v875_v15 = vadd.f32 %v1343_v14, %v1333_v10 }
 0x634   :  { %v869_v6 = vpop.f32.mrf.mxu1 }
 0x635   :  { %v870_v7 = vadd.f32 %v869_v6, %v772_v11  ;;  %v893_v16 = vadd.f32 %v1220_v5, %v875_v15 }
 0x636   :  { %v1346_v17 = vpop.f32.mrf.mxu1 }
 0x637   :  { %v892_v18 = vadd.f32 %v1220_v5, %v870_v7  ;;  %v885_v19 = vadd.f32 %v1346_v17, %v1336_v12  ;;  %v897_v24 = vmax.f32 %v893_v16, 0.0 }
 0x638   :  { %v879_v20 = vpop.f32.mrf.mxu1 }
 0x639   :  { %v896_v22 = vmax.f32 %v892_v18, 0.0  ;;  %v880_v23 = vadd.f32 %v879_v20, %v782_v13  ;;  %v895_v25 = vadd.f32 %v1220_v5, %v885_v19 }
 0x63a   :  { %v1090_v26 = vpop.f32.mrf.mxu1 }
 0x63b   :  { %v894_v27 = vadd.f32 %v1220_v5, %v880_v23  ;;  %v1091_v28 = vadd.f32 %v1090_v26, %v1020_v21  ;;  %1349 = vmatprep.mubr.msk.f32.mxu0 %vm33_vm0, %v896_v22  ;;  %v899_v32 = vmax.f32 %v895_v25, 0.0 }
 0x63c   :  { %1350 = vmatmul.mubr.msk.f32.vlgmr.msra.gmra.mxu0 %vm33_vm0, %v897_v24  ;;  %v1361_v29 = vpop.f32.mrf.mxu1 }
 0x63d   :  { %v898_v30 = vmax.f32 %v894_v27, 0.0  ;;  %v1094_v31 = vmax.f32 %v1091_v28, 0.0 }
 0x63f   :  { %1352 = vmatprep.mubr.msk.f32.mxu0 %vm33_vm0, %v898_v30  ;;  %1365 = vmatmul.mubr.msk.f32.vlgmr.msra.gmra.mxu1 %vm33_vm0, %v1094_v31 }
 0x640   :  { %1353 = vmatmul.mubr.msk.f32.gmra.mxu0 %vm33_vm0, %v899_v32 }
 0x6fc   :  { %v1351_v34 = vpop.f32.mrf.mxu0 }
 0x6fd   :  { %v990_v35 = vadd.f32 %v1351_v34, %v1221_v33 }
 0x6fe   :  { %v984_v37 = vpop.f32.mrf.mxu0 }
 0x6ff   :  { %1005 = vst.msk [vmem:[%s1638_s4 + $0x8] sm:$0xff] %vm1003_vm11, %v990_v35  ;;  %v985_v38 = vadd.f32 %v1221_v33, %v984_v37  ;;  %v1166_v39 = vpop.f32.mrf.mxu1 }
 0x700   :  { %v1167_v40 = vadd.f32 %v1166_v39, %v1096_v36  ;;  %v1354_v41 = vpop.f32.mrf.mxu0 }
 0x701   :  { %1004 = vst.msk [vmem:[%s1638_s4] sm:$0xff] %vm1003_vm11, %v985_v38  ;;  %v1000_v42 = vadd.f32 %v1354_v41, %v1221_v33  ;;  %v1366_v43 = vpop.f32.mrf.mxu1 }
 0x702   :  { %v994_v44 = vpop.f32.mrf.mxu0  ;;  %1171 = vst.msk [vmem:[#allocation2] sm:$0x1] %vm1170_vm12, %v1167_v40 }
 0x703   :  { %1007 = vst.msk [vmem:[%s1638_s4 + $0x18] sm:$0xff] %vm1003_vm11, %v1000_v42  ;;  %v995_v45 = vadd.f32 %v1221_v33, %v994_v44 }
 0x704   :  { %1408 = shalt.err (!%p1405_p4)
}
 0x705   :  { %1183 = dma.vmem_to_hbm [thread:$0]  %s1181_s24, 16, %s1639_s5, [#allocation3]   ;;  %1006 = vst.msk [vmem:[%s1638_s4 + $0x10] sm:$0xff] %vm1003_vm11, %v995_v45 }
 0x706   :  { %1417 = dma.done.wait [#allocation3], 16  }
 0x707   :  { %1418 = vsyncadd [#allocation3], 4294967280 }
 0x708   :  { %1189 = vsyncpa [#allocation3], 1 }

</bundles_post_ra>
